<compile_context>
chip_gen: v6e
topology: v6e:2x2x1
jax: 0.10.0
libtpu: 0.0.40
codegen_flags: <defaults>
</compile_context>

<pallas_src>
import jax
import jax.numpy as jnp
import numpy as np
from jax.experimental import pallas as pl
from jax.experimental.pallas import tpu as pltpu


def _decoder_kernel(x_ref, phi_ref, w1a_ref, w1b_ref, b1_ref, w2_ref, b2_ref,
                    out_ref):
    # First layer: split-K form of concat([x, phi], axis=1) @ W1 + b1.
    # Activations are cast to bf16 in-kernel (no extra HBM pass); the MXU
    # accumulates in f32 via preferred_element_type.
    xb = x_ref[...].astype(jnp.bfloat16)
    pb = phi_ref[...].astype(jnp.bfloat16)
    h = jnp.dot(xb, w1a_ref[...], preferred_element_type=jnp.float32)
    h = h + jnp.dot(pb, w1b_ref[...], preferred_element_type=jnp.float32)
    h = jnp.maximum(h + b1_ref[...], 0.0)
    # Second layer: hidden @ W2 + b2 (hidden cast back to bf16 for the MXU).
    logits = jnp.dot(h.astype(w2_ref.dtype), w2_ref[...],
                     preferred_element_type=jnp.float32)
    out_ref[...] = (logits + b2_ref[...]).astype(out_ref.dtype)


def _round_up(n: int, m: int) -> int:
    return ((n + m - 1) // m) * m


def decoder_forward(x, phi, w1, b1, w2, b2, *, tb: int = 1024,
                    out_dtype=jnp.bfloat16):
    """x, phi: [B, E]; w1: [2E, E]; b1: [E]; w2: [E, C]; b2: [C] -> [B, C].

    out_dtype defaults to bf16 to halve logits writeback (f32 accumulation is
    kept inside the kernel); pass jnp.float32 for full-precision output.
    """
    B, E = x.shape
    C = w2.shape[1]
    assert w1.shape == (2 * E, E)
    assert phi.shape == (B, E) and b1.shape == (E,) and b2.shape == (C,)

    # --- tile selection ------------------------------------------------------
    C_pad = _round_up(C, 128)                    # lane-dense output stores
    B_ceil = _round_up(B, 8)                     # f32 sublane packing
    tb = min(_round_up(max(tb, 8), 8), B_ceil)   # never larger than the batch
    # Keep >= 2 grid steps when the batch allows it so v7x's two TensorCores
    # (dimension_semantics=("parallel",)) both get work and the pipeline has
    # something to overlap.  Harmless on v5e/v6e (1 TC).
    if tb >= B_ceil and B_ceil >= 16:
        tb = _round_up(B_ceil // 2, 8)
    B_pad = _round_up(B, tb)
    n_tiles = B_pad // tb

    # --- inputs: no concat/cast pass; pad batch rows only if needed ----------
    if B_pad != B:
        x_in = jnp.pad(x, ((0, B_pad - B), (0, 0)))
        phi_in = jnp.pad(phi, ((0, B_pad - B), (0, 0)))
    else:
        x_in, phi_in = x, phi

    # --- weights: tiny one-time prep (split W1, zero-pad W2/b2 classes) ------
    w1a = w1[:E, :].astype(jnp.bfloat16)
    w1b = w1[E:, :].astype(jnp.bfloat16)
    b1_2d = b1.reshape(1, E).astype(jnp.float32)
    w2_bf = jnp.pad(w2, ((0, 0), (0, C_pad - C))).astype(jnp.bfloat16)
    b2_2d = jnp.pad(b2, (0, C_pad - C)).reshape(1, C_pad).astype(jnp.float32)

    out_itemsize = np.dtype(out_dtype).itemsize
    cost = pl.CostEstimate(
        flops=2 * B_pad * (2 * E * E + E * C_pad),
        transcendentals=0,
        bytes_accessed=(B_pad * 2 * E * x.dtype.itemsize           # x + phi
                        + (2 * E * E + E * C_pad) * 2              # bf16 weights
                        + (E + C_pad) * 4                          # f32 biases
                        + B_pad * C_pad * out_itemsize),           # logits
    )

    out = pl.pallas_call(
        _decoder_kernel,
        out_shape=jax.ShapeDtypeStruct((B_pad, C_pad), out_dtype),
        grid=(n_tiles,),
        in_specs=[
            pl.BlockSpec((tb, E), lambda i: (i, 0)),     # x:   streams over batch
            pl.BlockSpec((tb, E), lambda i: (i, 0)),     # phi: streams over batch
            pl.BlockSpec((E, E), lambda i: (0, 0)),      # W1[:E]  (VMEM-resident)
            pl.BlockSpec((E, E), lambda i: (0, 0)),      # W1[E:]  (VMEM-resident)
            pl.BlockSpec((1, E), lambda i: (0, 0)),      # b1      (VMEM-resident)
            pl.BlockSpec((E, C_pad), lambda i: (0, 0)),  # W2      (VMEM-resident)
            pl.BlockSpec((1, C_pad), lambda i: (0, 0)),  # b2      (VMEM-resident)
        ],
        out_specs=pl.BlockSpec((tb, C_pad), lambda i: (i, 0)),
        compiler_params=pltpu.CompilerParams(
            # Batch tiles are independent -> shard across v7x's 2 TensorCores.
            dimension_semantics=("parallel",),
            # Headroom above v5e's 16 MiB default scoped VMEM; actual use is
            # ~1-5 MiB even at tb=4096, safe under v7x's 64 MiB physical VMEM.
            vmem_limit_bytes=32 * 1024 * 1024,
        ),
        cost_estimate=cost,
    )(x_in, phi_in, w1a, w1b, b1_2d, w2_bf, b2_2d)

    # Strip batch / class padding (pad class columns are exactly zero).
    return out[:B, :C]


def decoder_reference(x, phi, w1, b1, w2, b2):
    """Pure-JAX f32 reference mirroring the PyTorch module."""
    cat = jnp.concatenate([x, phi], axis=1)
    h = jnp.maximum(cat @ w1 + b1, 0.0)
    return h @ w2 + b2


if __name__ == "__main__":
    # Small shapes consistent with the module's forward.
    B = 48           # batch (tile logic -> 2 grid steps, exercises pipelining)
    E = 32           # embed_dim
    C = 16           # num_classes
    # num_layers is unused by Decoder.forward.

    key = jax.random.PRNGKey(0)
    kx, kphi, kw1, kb1, kw2, kb2 = jax.random.split(key, 6)

    x = jax.random.normal(kx, (B, E), dtype=jnp.float32)
    phi = jax.random.normal(kphi, (B, E), dtype=jnp.float32)

    # Deterministic PyTorch-style uniform init: U(-1/sqrt(fan_in), 1/sqrt(fan_in)).
    lim1 = 1.0 / jnp.sqrt(2.0 * E)
    lim2 = 1.0 / jnp.sqrt(float(E))
    w1 = jax.random.uniform(kw1, (2 * E, E), minval=-lim1, maxval=lim1, dtype=jnp.float32)
    b1 = jax.random.uniform(kb1, (E,), minval=-lim1, maxval=lim1, dtype=jnp.float32)
    w2 = jax.random.uniform(kw2, (E, C), minval=-lim2, maxval=lim2, dtype=jnp.float32)
    b2 = jax.random.uniform(kb2, (C,), minval=-lim2, maxval=lim2, dtype=jnp.float32)

    logits = decoder_forward(x, phi, w1, b1, w2, b2)
    jax.block_until_ready(logits)

    ref = decoder_reference(x, phi, w1, b1, w2, b2)
    assert logits.shape == (B, C)
    # bf16 MXU path + bf16 logits vs f32 reference -> loosened tolerance.
    err = jnp.max(jnp.abs(logits.astype(jnp.float32) - ref))
    assert err < 3e-2, f"mismatch vs reference: max|err| = {err}"

    print("KERNEL_OK")
</pallas_src>

<mosaic_0001>
module attributes {stable_mosaic.version = 11 : i64} {
  func.func @_decoder_kernel(%arg0: i32, %arg1: memref<24x32xf32, #tpu.memory_space<vmem>>, %arg2: memref<24x32xf32, #tpu.memory_space<vmem>>, %arg3: memref<32x32xbf16, #tpu.memory_space<vmem>>, %arg4: memref<32x32xbf16, #tpu.memory_space<vmem>>, %arg5: memref<1x32xf32, #tpu.memory_space<vmem>>, %arg6: memref<32x128xbf16, #tpu.memory_space<vmem>>, %arg7: memref<1x128xf32, #tpu.memory_space<vmem>>, %arg8: memref<24x128xbf16, #tpu.memory_space<vmem>>) attributes {dimension_semantics = [#tpu.dimension_semantics<parallel>], iteration_bounds = array<i64: 2>, scalar_prefetch = 0 : i64, scratch_operands = 0 : i64, tpu.core_type = #tpu.core_type<tc>, window_params = [{transform_indices = @transform_0, window_bounds = array<i64: 24, 32>}, {transform_indices = @transform_1, window_bounds = array<i64: 24, 32>}, {pipeline_mode = #tpu.pipeline_mode<synchronous>, transform_indices = @transform_2, window_bounds = array<i64: 32, 32>}, {pipeline_mode = #tpu.pipeline_mode<synchronous>, transform_indices = @transform_3, window_bounds = array<i64: 32, 32>}, {pipeline_mode = #tpu.pipeline_mode<synchronous>, transform_indices = @transform_4, window_bounds = array<i64: 1, 32>}, {pipeline_mode = #tpu.pipeline_mode<synchronous>, transform_indices = @transform_5, window_bounds = array<i64: 32, 128>}, {pipeline_mode = #tpu.pipeline_mode<synchronous>, transform_indices = @transform_6, window_bounds = array<i64: 1, 128>}, {transform_indices = @transform_7, window_bounds = array<i64: 24, 128>}]} {
    %c0 = arith.constant 0 : index
    %c0_0 = arith.constant 0 : index
    %0 = vector.load %arg1[%c0, %c0_0] : memref<24x32xf32, #tpu.memory_space<vmem>>, vector<24x32xf32>
    %1 = arith.truncf %0 : vector<24x32xf32> to vector<24x32xbf16>
    %c0_1 = arith.constant 0 : index
    %c0_2 = arith.constant 0 : index
    %2 = vector.load %arg2[%c0_1, %c0_2] : memref<24x32xf32, #tpu.memory_space<vmem>>, vector<24x32xf32>
    %3 = arith.truncf %2 : vector<24x32xf32> to vector<24x32xbf16>
    %c0_3 = arith.constant 0 : index
    %c0_4 = arith.constant 0 : index
    %4 = vector.load %arg3[%c0_3, %c0_4] : memref<32x32xbf16, #tpu.memory_space<vmem>>, vector<32x32xbf16>
    %cst = arith.constant dense<0.000000e+00> : vector<24x32xf32>
    %5 = tpu.matmul %1, %4, %cst {dimension_numbers = #tpu.dot_dimension_numbers<[1], [0], [0], [1], [0, 0, 1, 1], [], []>} : vector<24x32xbf16>, vector<32x32xbf16>, vector<24x32xf32> -> vector<24x32xf32>
    %c0_5 = arith.constant 0 : index
    %c0_6 = arith.constant 0 : index
    %6 = vector.load %arg4[%c0_5, %c0_6] : memref<32x32xbf16, #tpu.memory_space<vmem>>, vector<32x32xbf16>
    %cst_7 = arith.constant dense<0.000000e+00> : vector<24x32xf32>
    %7 = tpu.matmul %3, %6, %cst_7 {dimension_numbers = #tpu.dot_dimension_numbers<[1], [0], [0], [1], [0, 0, 1, 1], [], []>} : vector<24x32xbf16>, vector<32x32xbf16>, vector<24x32xf32> -> vector<24x32xf32>
    %8 = arith.addf %5, %7 : vector<24x32xf32>
    %c0_8 = arith.constant 0 : index
    %c0_9 = arith.constant 0 : index
    %9 = vector.load %arg5[%c0_8, %c0_9] : memref<1x32xf32, #tpu.memory_space<vmem>>, vector<1x32xf32>
    %10 = vector.broadcast %9 : vector<1x32xf32> to vector<24x32xf32>
    %11 = arith.addf %8, %10 : vector<24x32xf32>
    %cst_10 = arith.constant 0.000000e+00 : f32
    %12 = vector.broadcast %cst_10 : f32 to vector<24x32xf32>
    %13 = arith.maximumf %11, %12 : vector<24x32xf32>
    %14 = arith.truncf %13 : vector<24x32xf32> to vector<24x32xbf16>
    %c0_11 = arith.constant 0 : index
    %c0_12 = arith.constant 0 : index
    %15 = vector.load %arg6[%c0_11, %c0_12] : memref<32x128xbf16, #tpu.memory_space<vmem>>, vector<32x128xbf16>
    %cst_13 = arith.constant dense<0.000000e+00> : vector<24x128xf32>
    %16 = tpu.matmul %14, %15, %cst_13 {dimension_numbers = #tpu.dot_dimension_numbers<[1], [0], [0], [1], [0, 0, 1, 1], [], []>} : vector<24x32xbf16>, vector<32x128xbf16>, vector<24x128xf32> -> vector<24x128xf32>
    %c0_14 = arith.constant 0 : index
    %c0_15 = arith.constant 0 : index
    %17 = vector.load %arg7[%c0_14, %c0_15] : memref<1x128xf32, #tpu.memory_space<vmem>>, vector<1x128xf32>
    %18 = vector.broadcast %17 : vector<1x128xf32> to vector<24x128xf32>
    %19 = arith.addf %16, %18 : vector<24x128xf32>
    %20 = arith.truncf %19 : vector<24x128xf32> to vector<24x128xbf16>
    %c0_16 = arith.constant 0 : index
    %c0_17 = arith.constant 0 : index
    %21 = vector.load %arg8[%c0_16, %c0_17] : memref<24x128xbf16, #tpu.memory_space<vmem>>, vector<24x128xbf16>
    tpu.vector_store %arg8[%c0_16, %c0_17], %20 {strides = array<i32>} : memref<24x128xbf16, #tpu.memory_space<vmem>>, vector<24x128xbf16>,
    return
  }
  func.func @transform_0(%arg0: i32) -> (i32, i32) {
    %c0_i32 = arith.constant 0 : i32
    %c0_i32_0 = arith.constant 0 : i32
    return %arg0, %c0_i32 : i32, i32
  }
  func.func @transform_1(%arg0: i32) -> (i32, i32) {
    %c0_i32 = arith.constant 0 : i32
    %c0_i32_0 = arith.constant 0 : i32
    return %arg0, %c0_i32 : i32, i32
  }
  func.func @transform_2(%arg0: i32) -> (i32, i32) {
    %c0_i32 = arith.constant 0 : i32
    %c0_i32_0 = arith.constant 0 : i32
    %c0_i32_1 = arith.constant 0 : i32
    return %c0_i32, %c0_i32_0 : i32, i32
  }
  func.func @transform_3(%arg0: i32) -> (i32, i32) {
    %c0_i32 = arith.constant 0 : i32
    %c0_i32_0 = arith.constant 0 : i32
    %c0_i32_1 = arith.constant 0 : i32
    return %c0_i32, %c0_i32_0 : i32, i32
  }
  func.func @transform_4(%arg0: i32) -> (i32, i32) {
    %c0_i32 = arith.constant 0 : i32
    %c0_i32_0 = arith.constant 0 : i32
    %c0_i32_1 = arith.constant 0 : i32
    return %c0_i32, %c0_i32_0 : i32, i32
  }
  func.func @transform_5(%arg0: i32) -> (i32, i32) {
    %c0_i32 = arith.constant 0 : i32
    %c0_i32_0 = arith.constant 0 : i32
    %c0_i32_1 = arith.constant 0 : i32
    return %c0_i32, %c0_i32_0 : i32, i32
  }
  func.func @transform_6(%arg0: i32) -> (i32, i32) {
    %c0_i32 = arith.constant 0 : i32
    %c0_i32_0 = arith.constant 0 : i32
    %c0_i32_1 = arith.constant 0 : i32
    return %c0_i32, %c0_i32_0 : i32, i32
  }
  func.func @transform_7(%arg0: i32) -> (i32, i32) {
    %c0_i32 = arith.constant 0 : i32
    %c0_i32_0 = arith.constant 0 : i32
    return %arg0, %c0_i32 : i32, i32
  }
}

</mosaic_0001>

<bundles_post_ra>
// kernel: tpu_custom_call.1
= control target key start
LH: loop header
LB: loop body
LE: loop exit
PB: predicated region body
PF: predicated region fallthrough
CT: control target
= control target key end

     0   :  { %12 = vsyncpa [#allocation3], 0  ;;  %s1008_s0 = inlined_call_operand.vmem [shape: f32[48,32], index: 0, kind: input, shape index: {}]   ;;  %s1009_s1 = inlined_call_operand.vmem [shape: f32[48,32], index: 1, kind: input, shape index: {}]   ;;  %s1010_s2 = inlined_call_operand.vmem [shape: bf16[32,32], index: 2, kind: input, shape index: {}]   ;;  %s1011_s3 = inlined_call_operand.vmem [shape: bf16[32,32], index: 3, kind: input, shape index: {}]   ;;  %s1012_s4 = inlined_call_operand.vmem [shape: f32[1,32], index: 4, kind: input, shape index: {}]   ;;  %s1013_s5 = inlined_call_operand.vmem [shape: bf16[32,128], index: 5, kind: input, shape index: {}]   ;;  %s1014_s6 = inlined_call_operand.vmem [shape: f32[1,128], index: 6, kind: input, shape index: {}]   ;;  %s1015_s7 = inlined_call_operand.hbm [shape: bf16[48,128], index: 7, kind: output, shape index: {}]  }
   0x1   :  { %14 = vsyncpa [#allocation3 + $0x1], 0  ;;  %s874_s24 = smov 0   ;;  %s876_s25 = smov 0  }
   0x2   :  { %s878_s26 = smov 0   ;;  %s880_s27 = smov 0  }
   0x3 LB: > { %s895_s28 = sadd.s32 4294967295, %s829_s27   ;;  %s650_s29 = sadd.s32 4294967294, %s829_s27   ;;  %s829_s27 = sphi %s880_s27, %s1021_s27   ;;  %s825_s26 = sphi %s878_s26, %s1020_s26   ;;  %s821_s25 = sphi %s876_s25, %s1019_s25   ;;  %s817_s24 = sphi %s874_s24, %s1018_s24  }
   0x4   : > { %s899_s30 = sadd.s32 1, %s829_s27   ;;  %s184_s8 = sadd.s32 1, %s825_s26 }
   0x5   : > { %s181_s9 = ssub.s32 %s829_s27, %s899_s30  ;;  %p194_p0 = scmp.ne.s32.totalorder %s825_s26, %s821_s25 }
   0x6   : > { %p182_p1 = scmp.eq.s32.totalorder %s181_s9, 0  ;;  %p195_p2 = scmp.eq.s32.totalorder %s895_s28, 1 }
   0x7   : > { %p200_p3 = scmp.ne.s32.totalorder %s821_s25, %s817_s24  ;;  %p201_p4 = scmp.eq.s32.totalorder %s650_s29, 1 }
   0x8   : > { %s910_s10 = scalar_select %p182_p1, %s825_s26, %s184_s8  }
   0x9   : > { %p912_p5 = por %p195_p2, %p194_p0  ;;  %p916_p6 = por %p201_p4, %p200_p3 }
   0xa   : > { %p653_p7 = scmp.ge.s32.totalorder %s829_s27, 1  ;;  %p252_p8 = scmp.lt.s32.totalorder %s829_s27, 3 }
   0xc   : > { %p253_p9 = pnand %p653_p7, %p252_p8 }
   0xd   : > { %s289_s15 = smul.u32 (!%p253_p9), 3, %s895_s28  ;;  %s286_s21 = sand.u32 (!%p253_p9), 1, %s821_s25  }
   0xe   : > { %256 = sbr.rel (%p253_p9) target bundleno = 454 (0x1c6), region = 48  ;;  %s968_s17 = scalar_lea.sflag (!%p253_p9), [#allocation3], %s286_s21 }
   0xf   : > { %p290_p10 = scmp.lt.s32.totalorder (!%p253_p9), %s289_s15, 5  ;;  %s831_s18 = smov (!%p253_p9), [#allocation2]  }
  0x10   : > { %s773_s19 = sshll.u32 (!%p253_p9), %s831_s18, 4  ;;  %s774_s19 = int_to_ptr.vmem [resolvable:$false] %s773_s19 }
  0x11   : > { %s775_s20 = scalar_lea.vmem (!%p253_p9), %s774_s19, 384 }
  0x13   : > { %v763_v0 = vld [vmem:[%s1011_s3 + $0x8] sm:$0xff]   ;;  %v765_v2 = vld [vmem:[%s1011_s3] sm:$0xff]   ;;  %s1023_s15 = smov (!%p290_p10, %s289_s15), 5  ;;  %vm333_vm0 = vcmask 261120  }
  0x14   : > { %v764_v1 = vld [vmem:[%s1010_s2 + $0x8] sm:$0xff]   ;;  %697 = vmatprep.subr.bf16.mxu0 %v763_v0  ;;  %v766_v3 = vld [vmem:[%s1010_s2] sm:$0xff]   ;;  %s654_s22 = sshll.u32 %s1023_s15, 3 }
  0x15   : > { %705 = vmatprep.subr.bf16.mxu1 %v764_v1  ;;  %698 = vmatpush3.bf16.msra.mxu0 %v763_v0  ;;  %s299_s8 = scalar_lea.vmem %s1009_s1, %s654_s22  ;;  %s293_s14 = scalar_lea.vmem %s1008_s0, %s654_s22  ;;  %v767_v14 = vld [vmem:[%s1013_s5 + $0x8] sm:$0xff]   ;;  %v768_v15 = vld [vmem:[%s1013_s5] sm:$0xff]  }
  0x16   : > { %706 = vmatpush3.bf16.msra.mxu1 %v764_v1  ;;  %699 = vmatprep.subr.bf16.mxu0 %v765_v2  ;;  %v308_v4 = vld [vmem:[%s299_s8] sm:$0xff]  ;;  %v309_v5 = vld [vmem:[%s299_s8 + $0x8] sm:$0xff]  ;;  %v310_v6 = vld [vmem:[%s299_s8 + $0x10] sm:$0xff]  ;;  %s721_s22 = smul.u32 12, %s286_s21 }
  0x17   : > { %707 = vmatprep.subr.bf16.mxu1 %v766_v3  ;;  %v311_v7 = vpack.c.bf16 %v309_v5, %v308_v4  ;;  %v312_v8 = vpack.c.bf16 %v310_v6, %v310_v6  ;;  %v303_v9 = vld [vmem:[%s293_s14] sm:$0xff]  ;;  %v304_v10 = vld [vmem:[%s293_s14 + $0x8] sm:$0xff]  ;;  %v305_v11 = vld [vmem:[%s293_s14 + $0x10] sm:$0xff]  ;;  %s679_s8 = smul.u32 192, %s895_s28 }
  0x18   : > { %v306_v12 = vpack.c.bf16 %v304_v10, %v303_v9  ;;  %v307_v13 = vpack.c.bf16 %v305_v11, %v305_v11  ;;  %v664_v21 = vld [vmem:[%s1012_s4] ss:$0 sm:$0xff]  ;;  %s288_s9 = scalar_lea.vmem [#allocation2], %s721_s22 }
  0x19   : > { %700 = vmatpush3.bf16.msra.mxu0 %v765_v2  ;;  %701 = vmatprep.mubr.msk.bf16.mxu0 %vm333_vm0, %v311_v7  ;;  %v665_v36 = vld [vmem:[%s1014_s6] ss:$0 sm:$0xff]  ;;  %s576_s13 = sshll.u32 %s288_s9, 4  ;;  %s966_s16 = scalar_lea.hbm %s1015_s7, %s679_s8  ;;  %s961_s13 = int_to_ptr.vmem [resolvable:$true] %s576_s13 }
  0x1a   : > { %708 = vmatpush3.bf16.msra.mxu1 %v766_v3  ;;  %709 = vmatprep.mubr.msk.bf16.mxu1 %vm333_vm0, %v306_v12  ;;  %s769_s28 = scalar_lea.vmem %s961_s13, 192  ;;  %p776_p0 = scmp.lt.s32.totalorder %s961_s13, %s774_s19 }
  0x1b   : > { %713 = vmatprep.subr.bf16.mxu0 %v767_v14  ;;  %p770_p11 = scmp.ne.s32.totalorder %s961_s13, %s769_s28  ;;  %p777_p1 = scmp.lt.s32.totalorder %s775_s20, %s769_s28 }
  0x1c   : > { %702 = vmatmul.mubr.msk.bf16.vlgmr.msra.gmra.mxu0 %vm333_vm0, %v312_v8 }
  0x1d   : > { %710 = vmatmul.mubr.msk.bf16.vlgmr.msra.gmra.mxu1 %vm333_vm0, %v307_v13  ;;  %714 = vmatpush3.bf16.msra.mxu0 %v767_v14  ;;  %p771_p12 = pnand %p770_p11, %p912_p5  ;;  %p778_p2 = por %p777_p1, %p776_p0 }
  0x1e   : > { %715 = vmatprep.subr.bf16.mxu0 %v768_v15 }
  0x1f   : > { %p772_p13 = pneg %p771_p12 }
  0x21   : > { %716 = vmatpush3.bf16.msra.mxu0 %v768_v15  ;;  %p779_p3 = pnand %p778_p2, %p772_p13 }
  0xdc   : > { %v703_v16 = vpop.f32.mrf.mxu0 }
  0xdd   : > { %v711_v17 = vpop.f32.mrf.mxu1 }
  0xde   : > { %v374_v18 = vpop.f32.mrf.mxu0  ;;  %v449_v19 = vadd.f32 %v711_v17, %v703_v16 }
  0xdf   : > { %v440_v20 = vpop.f32.mrf.mxu1 }
  0xe0   : > { %v441_v22 = vadd.f32 %v440_v20, %v374_v18  ;;  %v704_v23 = vpop.f32.mrf.mxu0  ;;  %v463_v26 = vadd.f32 %v664_v21, %v449_v19 }
  0xe1   : > { %v712_v24 = vpop.f32.mrf.mxu1 }
  0xe2   : > { %v377_v25 = vpop.f32.mrf.mxu0  ;;  %v461_v28 = vadd.f32 %v664_v21, %v441_v22  ;;  %v466_v31 = vmax.f32 %v463_v26, 0.0 }
  0xe3   : > { %v443_v27 = vpop.f32.mrf.mxu1 }
  0xe4   : > { %v444_v29 = vadd.f32 %v443_v27, %v377_v25  ;;  %v464_v32 = vmax.f32 %v461_v28, 0.0  ;;  %v468_v35 = vpack.c.bf16 %v466_v31, %v466_v31 }
  0xe6   : > { %v462_v30 = vadd.f32 %v664_v21, %v444_v29 }
  0xe8   : > { %v465_v33 = vmax.f32 %v462_v30, 0.0 }
  0xea   : > { %v467_v34 = vpack.c.bf16 %v465_v33, %v464_v32 }
  0xec   : > { %717 = vmatprep.mubr.msk.bf16.mxu0 %vm333_vm0, %v467_v34 }
  0xed   : > { %718 = vmatmul.mubr.msk.bf16.vlgmr.msra.gmra.mxu0 %vm333_vm0, %v468_v35 }
 0x1ad   : > { %v719_v37 = vpop.f32.mrf.mxu0 }
 0x1ae   : > { %v541_v38 = vadd.f32 %v719_v37, %v665_v36 }
 0x1af   : > { %v532_v39 = vpop.f32.mrf.mxu0 }
 0x1b0   : > { %v678_v40 = vpack.c.bf16 %v541_v38, %v541_v38  ;;  %v533_v43 = vadd.f32 %v665_v36, %v532_v39 }
 0x1b1   : > { %v720_v41 = vpop.f32.mrf.mxu0 }
 0x1b2   : > { %561 = vst [vmem:[%s288_s9 + $0x8] sm:$0xf] %v678_v40 }
 0x1b3   : > { %v535_v42 = vpop.f32.mrf.mxu0 }
 0x1b4   : > { %v536_v44 = vadd.f32 %v665_v36, %v535_v42 }
 0x1b6   : > { %v683_v45 = vpack.c.bf16 %v536_v44, %v533_v43 }
 0x1b8   : > { %684 = vst [vmem:[%s288_s9] sm:$0xff] %v683_v45  }
 0x1b9   : > { %782 = shalt.err (!%p779_p3)
}
 0x1ba   : > { %s783_s21 = scalar_lea.hbm %s966_s16, 192  ;;  %s787_s29 = scalar_lea.hbm %s1015_s7, 384 }
 0x1bb   : > { %p784_p4 = scmp.ne.s32.totalorder %s966_s16, %s783_s21  ;;  %p788_p9 = scmp.lt.s32.totalorder %s966_s16, %s1015_s7 }
 0x1bc   : > { %p789_p10 = scmp.lt.s32.totalorder %s787_s29, %s783_s21 }
 0x1bd   : > { %p785_p7 = pnand %p784_p4, %p912_p5 }
 0x1be   : > { %p790_p11 = por %p789_p10, %p788_p9 }
 0x1bf   : > { %p786_p8 = pneg %p785_p7 }
 0x1c1   : > { %p791_p12 = pnand %p790_p11, %p786_p8 }
 0x1c3   : > { %794 = shalt.err (!%p791_p12)
}
 0x1c4   : > { %s832_s14 = smov 64   ;;  %s833_s15 = smov 4  }
 0x1c5   : > { %722 = dma.vmem_to_hbm [thread:$0]  (%p912_p5), %s961_s13, 192, %s966_s16, %s968_s17, %s832_s14, %s832_s14, %s833_s15  }
 0x1c6 PF: > { %p728_p13 = scmp.ge.s32.totalorder %s829_s27, 2  ;;  %s591_s28 = sand.u32 1, %s817_s24  }
 0x1c7   : > { %s592_s18 = scalar_lea.sflag [#allocation3], %s591_s28 }
 0x1c8   : > { %p725_p0 = pnand %p728_p13, %p916_p6 }
 0x1ca   : > { %p726_p1 = pneg %p725_p0 }
 0x1cc   : > { %812 = dma.done.wait (%p726_p1), %s592_s18, 192  }
 0x1cd   : > { %814 = vsyncadd (%p726_p1), %s592_s18, 4294967104  ;;  %p17_p2 = scmp.ge.s32.totalorder %s899_s30, 4   ;;  %s1018_s24 = smov %s821_s25 }
 0x1ce   : > { %s1019_s25 = smov %s825_s26  ;;  %s1020_s26 = smov %s910_s10 }
 0x1cf   : > { %s1021_s27 = smov %s899_s30  ;;  %19 = sbr.rel (!%p17_p2) target bundleno = 3 (0x3), region = 86 }
 0x1d4   :  { %597 = vsyncpa [#allocation3], 1 }
 0x1d5   :  { %599 = vsyncpa [#allocation3 + $0x1], 1 }

</bundles_post_ra>
